<compile_context>
chip_gen: v7x
topology: tpu7x:2x2x1
jax: 0.10.0
libtpu: 0.0.40
codegen_flags: <defaults>
</compile_context>

<pallas_src>
import jax
import jax.numpy as jnp
from jax.experimental import pallas as pl
from jax.experimental.pallas import tpu as pltpu

EPS = 1e-5
LANES = 128
WINDOW = 128          # every layer dot contracts over a full 128-row window

# ---- packed parameter slab layout (rows; all window starts are 8-aligned) ----
# Real data (never overlaps):
#   W1: rows   0:4,   cols 0:64      W2: rows   8:72,  cols 0:32
#   W3: rows  72:104, cols 0:16      W4: rows 104:120, cols 0:1
#   gamma1/beta1/gamma2/beta2/gamma3/beta3/b4: rows 232..238 (128-wide)
# 128-row dot windows (may overlap other layers' data: those rows are
# multiplied by activation lanes that are exactly zero):
W1_ROW, W2_ROW, W3_ROW, W4_ROW = 0, 8, 72, 104
VEC_ROW = 232
SLAB_ROWS = 240


def wireless_kernel(x_ref, slab_ref, o_ref):
    """Whole MLP forward for one small batch, entirely in VMEM, no grid."""
    B = x_ref.shape[0]
    inv_b = 1.0 / B

    def bn_relu_layer(a, w_view, g_idx, b_idx):
        # `a` is (B,128) with exact zeros in the pad lanes, so rows of the
        # 128-row weight window beyond the real fan-in contribute nothing.
        w = w_view[...]                                            # (128,128)
        h = jnp.dot(a, w, preferred_element_type=jnp.float32)      # main MXU dot
        # BN mean via associativity: mean(a @ W) == mean(a) @ W.  The sublane
        # reduce (XLU) and the (1,128)@(128,128) dot are independent of `h`.
        mean_a = jnp.sum(a, axis=0, keepdims=True) * inv_b
        mu = jnp.dot(mean_a, w, preferred_element_type=jnp.float32)
        c = h - mu
        # Biased batch variance, centered form; XLU reduce (not a 3rd MXU dot).
        var = jnp.sum(c * c, axis=0, keepdims=True) * inv_b
        hn = c * jax.lax.rsqrt(var + EPS)
        gamma = slab_ref[VEC_ROW + g_idx:VEC_ROW + g_idx + 1, :]
        beta = slab_ref[VEC_ROW + b_idx:VEC_ROW + b_idx + 1, :]
        # Pad lanes stay exactly 0: hn=0 there and beta pad lanes are 0.
        return jnp.maximum(hn * gamma + beta, 0.0)

    a = x_ref[...]                                                 # (B,128)
    a = bn_relu_layer(a, slab_ref.at[W1_ROW:W1_ROW + WINDOW, :], 0, 1)
    a = bn_relu_layer(a, slab_ref.at[W2_ROW:W2_ROW + WINDOW, :], 2, 3)
    a = bn_relu_layer(a, slab_ref.at[W3_ROW:W3_ROW + WINDOW, :], 4, 5)

    # fc4 -> relu.  W4's window has the real column in lane 0 and zeros in all
    # other (real-row) columns, so the output store is full-lane and pad lanes
    # are relu(0 + 0) = 0.
    w4 = slab_ref[W4_ROW:W4_ROW + WINDOW, :]
    b4 = slab_ref[VEC_ROW + 6:VEC_ROW + 7, :]
    h = jnp.dot(a, w4, preferred_element_type=jnp.float32) + b4
    o_ref[...] = jnp.maximum(h, 0.0)


def wireless_forward(x, slab):
    """x: (B, input_size) f32, slab: (240, 128) packed params -> (B, 1)."""
    B, in_dim = x.shape
    # Lane-pad the input so the layer-1 dot LHS is a clean unmasked vreg.
    x_pad = jnp.zeros((B, LANES), dtype=jnp.float32).at[:, :in_dim].set(x)
    vmem = lambda: pl.BlockSpec(memory_space=pltpu.MemorySpace.VMEM)
    out_padded = pl.pallas_call(
        wireless_kernel,
        out_shape=jax.ShapeDtypeStruct((B, LANES), jnp.float32),
        in_specs=[vmem(), vmem()],
        out_specs=vmem(),
        # No grid: the whole forward pass is a single kernel invocation.
    )(x_pad, slab)
    # Real output is lane 0 of the lane-dense result.
    return out_padded[:, :1]


def init_params(key, input_size=4, output_size=1):
    """kaiming_normal (fan_in, relu) init, matching the module's init_weights.

    Returns ((w1, w2, w3, w4), slab): raw (in, out) weights for the pure-JAX
    reference, plus the packed (240, 128) parameter slab for the kernel.
    """
    dims = [(input_size, 64), (64, 32), (32, 16), (16, output_size)]
    keys = jax.random.split(key, len(dims))
    raw = []
    for k, (fan_in, fan_out) in zip(keys, dims):
        std = (2.0 / fan_in) ** 0.5            # kaiming_normal, fan_in, relu
        raw.append(std * jax.random.normal(k, (fan_in, fan_out), jnp.float32))
    w1, w2, w3, w4 = raw

    slab = jnp.zeros((SLAB_ROWS, LANES), dtype=jnp.float32)
    slab = slab.at[W1_ROW:W1_ROW + input_size, :64].set(w1)
    slab = slab.at[W2_ROW:W2_ROW + 64, :32].set(w2)
    slab = slab.at[W3_ROW:W3_ROW + 32, :16].set(w3)
    slab = slab.at[W4_ROW:W4_ROW + 16, :output_size].set(w4)
    # BN affine params: gamma=1 over the real lanes, beta=0; fc4 bias = 0.
    slab = slab.at[VEC_ROW + 0, :64].set(1.0)   # gamma1
    slab = slab.at[VEC_ROW + 2, :32].set(1.0)   # gamma2
    slab = slab.at[VEC_ROW + 4, :16].set(1.0)   # gamma3
    # rows VEC_ROW+1/3/5 (betas), VEC_ROW+6 (b4) stay zero.
    return (w1, w2, w3, w4), slab


def reference_forward(x, raw_weights):
    """Pure-JAX reference using the raw (unpacked) weights."""
    w1, w2, w3, w4 = raw_weights

    def bn_relu(h):  # training-mode BN, gamma=1, beta=0
        mu = jnp.mean(h, axis=0, keepdims=True)
        var = jnp.mean((h - mu) ** 2, axis=0, keepdims=True)
        return jnp.maximum((h - mu) / jnp.sqrt(var + EPS), 0.0)

    h = bn_relu(x @ w1)
    h = bn_relu(h @ w2)
    h = bn_relu(h @ w3)
    return jnp.maximum(h @ w4, 0.0)


if __name__ == "__main__":
    key = jax.random.PRNGKey(0)
    k_x, k_p = jax.random.split(key)

    B, INPUT_SIZE, OUTPUT_SIZE = 8, 4, 1   # B >= 2 (PyTorch BN training mode)
    x = jax.random.normal(k_x, (B, INPUT_SIZE), dtype=jnp.float32)
    raw, slab = init_params(k_p, INPUT_SIZE, OUTPUT_SIZE)

    out = wireless_forward(x, slab)
    out = jax.block_until_ready(out)

    ref = reference_forward(x, raw)
    assert out.shape == (B, OUTPUT_SIZE)
    assert jnp.allclose(out, ref, atol=1e-3, rtol=1e-3)

    # TODO(synk): running_mean/running_var buffer updates (PyTorch training
    # side-effect) are not modeled; only the forward activations are produced.
    print("KERNEL_OK")
</pallas_src>

<mosaic_0001>
module attributes {stable_mosaic.version = 11 : i64} {
  func.func @wireless_kernel(%arg0: memref<8x128xf32, #tpu.memory_space<vmem>>, %arg1: memref<240x128xf32, #tpu.memory_space<vmem>>, %arg2: memref<8x128xf32, #tpu.memory_space<vmem>>) attributes {dimension_semantics = [], scalar_prefetch = 0 : i64, scratch_operands = 0 : i64, tpu.core_type = #tpu.core_type<tc>} {
    %c0 = arith.constant 0 : index
    %c0_0 = arith.constant 0 : index
    %0 = vector.load %arg0[%c0, %c0_0] : memref<8x128xf32, #tpu.memory_space<vmem>>, vector<8x128xf32>
    %c0_1 = arith.constant 0 : index
    %c0_2 = arith.constant 0 : index
    %1 = vector.load %arg1[%c0_1, %c0_2] : memref<240x128xf32, #tpu.memory_space<vmem>>, vector<128x128xf32>
    %cst = arith.constant dense<0.000000e+00> : vector<8x128xf32>
    %2 = tpu.matmul %0, %1, %cst {dimension_numbers = #tpu.dot_dimension_numbers<[1], [0], [0], [1], [0, 0, 1, 1], [], []>} : vector<8x128xf32>, vector<128x128xf32>, vector<8x128xf32> -> vector<8x128xf32>
    %cst_3 = arith.constant dense<0.000000e+00> : vector<128xf32>
    %3 = vector.multi_reduction <add>, %0, %cst_3 [0] : vector<8x128xf32> to vector<128xf32>
    %4 = vector.shape_cast %3 : vector<128xf32> to vector<1x128xf32>
    %cst_4 = arith.constant 1.250000e-01 : f32
    %5 = vector.broadcast %cst_4 : f32 to vector<1x128xf32>
    %6 = arith.mulf %4, %5 : vector<1x128xf32>
    %cst_5 = arith.constant dense<0.000000e+00> : vector<1x128xf32>
    %7 = tpu.matmul %6, %1, %cst_5 {dimension_numbers = #tpu.dot_dimension_numbers<[1], [0], [0], [1], [0, 0, 1, 1], [], []>} : vector<1x128xf32>, vector<128x128xf32>, vector<1x128xf32> -> vector<1x128xf32>
    %8 = vector.broadcast %7 : vector<1x128xf32> to vector<8x128xf32>
    %9 = arith.subf %2, %8 : vector<8x128xf32>
    %10 = arith.mulf %9, %9 : vector<8x128xf32>
    %cst_6 = arith.constant dense<0.000000e+00> : vector<128xf32>
    %11 = vector.multi_reduction <add>, %10, %cst_6 [0] : vector<8x128xf32> to vector<128xf32>
    %12 = vector.shape_cast %11 : vector<128xf32> to vector<1x128xf32>
    %cst_7 = arith.constant 1.250000e-01 : f32
    %13 = vector.broadcast %cst_7 : f32 to vector<1x128xf32>
    %14 = arith.mulf %12, %13 : vector<1x128xf32>
    %cst_8 = arith.constant 9.99999974E-6 : f32
    %15 = vector.broadcast %cst_8 : f32 to vector<1x128xf32>
    %16 = arith.addf %14, %15 : vector<1x128xf32>
    %17 = math.rsqrt %16 : vector<1x128xf32>
    %18 = vector.broadcast %17 : vector<1x128xf32> to vector<8x128xf32>
    %19 = arith.mulf %9, %18 : vector<8x128xf32>
    %c232 = arith.constant 232 : index
    %c0_9 = arith.constant 0 : index
    %20 = vector.load %arg1[%c232, %c0_9] : memref<240x128xf32, #tpu.memory_space<vmem>>, vector<1x128xf32>
    %c233 = arith.constant 233 : index
    %c0_10 = arith.constant 0 : index
    %21 = vector.load %arg1[%c233, %c0_10] : memref<240x128xf32, #tpu.memory_space<vmem>>, vector<1x128xf32>
    %22 = vector.broadcast %20 : vector<1x128xf32> to vector<8x128xf32>
    %23 = arith.mulf %19, %22 : vector<8x128xf32>
    %24 = vector.broadcast %21 : vector<1x128xf32> to vector<8x128xf32>
    %25 = arith.addf %23, %24 : vector<8x128xf32>
    %cst_11 = arith.constant 0.000000e+00 : f32
    %26 = vector.broadcast %cst_11 : f32 to vector<8x128xf32>
    %27 = arith.maximumf %25, %26 : vector<8x128xf32>
    %c8 = arith.constant 8 : index
    %c0_12 = arith.constant 0 : index
    %28 = vector.load %arg1[%c8, %c0_12] : memref<240x128xf32, #tpu.memory_space<vmem>>, vector<128x128xf32>
    %cst_13 = arith.constant dense<0.000000e+00> : vector<8x128xf32>
    %29 = tpu.matmul %27, %28, %cst_13 {dimension_numbers = #tpu.dot_dimension_numbers<[1], [0], [0], [1], [0, 0, 1, 1], [], []>} : vector<8x128xf32>, vector<128x128xf32>, vector<8x128xf32> -> vector<8x128xf32>
    %cst_14 = arith.constant dense<0.000000e+00> : vector<128xf32>
    %30 = vector.multi_reduction <add>, %27, %cst_14 [0] : vector<8x128xf32> to vector<128xf32>
    %31 = vector.shape_cast %30 : vector<128xf32> to vector<1x128xf32>
    %cst_15 = arith.constant 1.250000e-01 : f32
    %32 = vector.broadcast %cst_15 : f32 to vector<1x128xf32>
    %33 = arith.mulf %31, %32 : vector<1x128xf32>
    %cst_16 = arith.constant dense<0.000000e+00> : vector<1x128xf32>
    %34 = tpu.matmul %33, %28, %cst_16 {dimension_numbers = #tpu.dot_dimension_numbers<[1], [0], [0], [1], [0, 0, 1, 1], [], []>} : vector<1x128xf32>, vector<128x128xf32>, vector<1x128xf32> -> vector<1x128xf32>
    %35 = vector.broadcast %34 : vector<1x128xf32> to vector<8x128xf32>
    %36 = arith.subf %29, %35 : vector<8x128xf32>
    %37 = arith.mulf %36, %36 : vector<8x128xf32>
    %cst_17 = arith.constant dense<0.000000e+00> : vector<128xf32>
    %38 = vector.multi_reduction <add>, %37, %cst_17 [0] : vector<8x128xf32> to vector<128xf32>
    %39 = vector.shape_cast %38 : vector<128xf32> to vector<1x128xf32>
    %cst_18 = arith.constant 1.250000e-01 : f32
    %40 = vector.broadcast %cst_18 : f32 to vector<1x128xf32>
    %41 = arith.mulf %39, %40 : vector<1x128xf32>
    %cst_19 = arith.constant 9.99999974E-6 : f32
    %42 = vector.broadcast %cst_19 : f32 to vector<1x128xf32>
    %43 = arith.addf %41, %42 : vector<1x128xf32>
    %44 = math.rsqrt %43 : vector<1x128xf32>
    %45 = vector.broadcast %44 : vector<1x128xf32> to vector<8x128xf32>
    %46 = arith.mulf %36, %45 : vector<8x128xf32>
    %c234 = arith.constant 234 : index
    %c0_20 = arith.constant 0 : index
    %47 = vector.load %arg1[%c234, %c0_20] : memref<240x128xf32, #tpu.memory_space<vmem>>, vector<1x128xf32>
    %c235 = arith.constant 235 : index
    %c0_21 = arith.constant 0 : index
    %48 = vector.load %arg1[%c235, %c0_21] : memref<240x128xf32, #tpu.memory_space<vmem>>, vector<1x128xf32>
    %49 = vector.broadcast %47 : vector<1x128xf32> to vector<8x128xf32>
    %50 = arith.mulf %46, %49 : vector<8x128xf32>
    %51 = vector.broadcast %48 : vector<1x128xf32> to vector<8x128xf32>
    %52 = arith.addf %50, %51 : vector<8x128xf32>
    %cst_22 = arith.constant 0.000000e+00 : f32
    %53 = vector.broadcast %cst_22 : f32 to vector<8x128xf32>
    %54 = arith.maximumf %52, %53 : vector<8x128xf32>
    %c72 = arith.constant 72 : index
    %c0_23 = arith.constant 0 : index
    %55 = vector.load %arg1[%c72, %c0_23] : memref<240x128xf32, #tpu.memory_space<vmem>>, vector<128x128xf32>
    %cst_24 = arith.constant dense<0.000000e+00> : vector<8x128xf32>
    %56 = tpu.matmul %54, %55, %cst_24 {dimension_numbers = #tpu.dot_dimension_numbers<[1], [0], [0], [1], [0, 0, 1, 1], [], []>} : vector<8x128xf32>, vector<128x128xf32>, vector<8x128xf32> -> vector<8x128xf32>
    %cst_25 = arith.constant dense<0.000000e+00> : vector<128xf32>
    %57 = vector.multi_reduction <add>, %54, %cst_25 [0] : vector<8x128xf32> to vector<128xf32>
    %58 = vector.shape_cast %57 : vector<128xf32> to vector<1x128xf32>
    %cst_26 = arith.constant 1.250000e-01 : f32
    %59 = vector.broadcast %cst_26 : f32 to vector<1x128xf32>
    %60 = arith.mulf %58, %59 : vector<1x128xf32>
    %cst_27 = arith.constant dense<0.000000e+00> : vector<1x128xf32>
    %61 = tpu.matmul %60, %55, %cst_27 {dimension_numbers = #tpu.dot_dimension_numbers<[1], [0], [0], [1], [0, 0, 1, 1], [], []>} : vector<1x128xf32>, vector<128x128xf32>, vector<1x128xf32> -> vector<1x128xf32>
    %62 = vector.broadcast %61 : vector<1x128xf32> to vector<8x128xf32>
    %63 = arith.subf %56, %62 : vector<8x128xf32>
    %64 = arith.mulf %63, %63 : vector<8x128xf32>
    %cst_28 = arith.constant dense<0.000000e+00> : vector<128xf32>
    %65 = vector.multi_reduction <add>, %64, %cst_28 [0] : vector<8x128xf32> to vector<128xf32>
    %66 = vector.shape_cast %65 : vector<128xf32> to vector<1x128xf32>
    %cst_29 = arith.constant 1.250000e-01 : f32
    %67 = vector.broadcast %cst_29 : f32 to vector<1x128xf32>
    %68 = arith.mulf %66, %67 : vector<1x128xf32>
    %cst_30 = arith.constant 9.99999974E-6 : f32
    %69 = vector.broadcast %cst_30 : f32 to vector<1x128xf32>
    %70 = arith.addf %68, %69 : vector<1x128xf32>
    %71 = math.rsqrt %70 : vector<1x128xf32>
    %72 = vector.broadcast %71 : vector<1x128xf32> to vector<8x128xf32>
    %73 = arith.mulf %63, %72 : vector<8x128xf32>
    %c236 = arith.constant 236 : index
    %c0_31 = arith.constant 0 : index
    %74 = vector.load %arg1[%c236, %c0_31] : memref<240x128xf32, #tpu.memory_space<vmem>>, vector<1x128xf32>
    %c237 = arith.constant 237 : index
    %c0_32 = arith.constant 0 : index
    %75 = vector.load %arg1[%c237, %c0_32] : memref<240x128xf32, #tpu.memory_space<vmem>>, vector<1x128xf32>
    %76 = vector.broadcast %74 : vector<1x128xf32> to vector<8x128xf32>
    %77 = arith.mulf %73, %76 : vector<8x128xf32>
    %78 = vector.broadcast %75 : vector<1x128xf32> to vector<8x128xf32>
    %79 = arith.addf %77, %78 : vector<8x128xf32>
    %cst_33 = arith.constant 0.000000e+00 : f32
    %80 = vector.broadcast %cst_33 : f32 to vector<8x128xf32>
    %81 = arith.maximumf %79, %80 : vector<8x128xf32>
    %c104 = arith.constant 104 : index
    %c0_34 = arith.constant 0 : index
    %82 = vector.load %arg1[%c104, %c0_34] : memref<240x128xf32, #tpu.memory_space<vmem>>, vector<128x128xf32>
    %c238 = arith.constant 238 : index
    %c0_35 = arith.constant 0 : index
    %83 = vector.load %arg1[%c238, %c0_35] : memref<240x128xf32, #tpu.memory_space<vmem>>, vector<1x128xf32>
    %cst_36 = arith.constant dense<0.000000e+00> : vector<8x128xf32>
    %84 = tpu.matmul %81, %82, %cst_36 {dimension_numbers = #tpu.dot_dimension_numbers<[1], [0], [0], [1], [0, 0, 1, 1], [], []>} : vector<8x128xf32>, vector<128x128xf32>, vector<8x128xf32> -> vector<8x128xf32>
    %85 = vector.broadcast %83 : vector<1x128xf32> to vector<8x128xf32>
    %86 = arith.addf %84, %85 : vector<8x128xf32>
    %cst_37 = arith.constant 0.000000e+00 : f32
    %87 = vector.broadcast %cst_37 : f32 to vector<8x128xf32>
    %88 = arith.maximumf %86, %87 : vector<8x128xf32>
    %c0_38 = arith.constant 0 : index
    %c0_39 = arith.constant 0 : index
    %89 = vector.load %arg2[%c0_38, %c0_39] : memref<8x128xf32, #tpu.memory_space<vmem>>, vector<8x128xf32>
    tpu.vector_store %arg2[%c0_38, %c0_39], %88 {strides = array<i32>} : memref<8x128xf32, #tpu.memory_space<vmem>>, vector<8x128xf32>,
    return
  }
}

</mosaic_0001>

<bundles_post_ra>
// kernel: tpu_custom_call.1
= control target key start
LH: loop header
LB: loop body
LE: loop exit
PB: predicated region body
PF: predicated region fallthrough
CT: control target
= control target key end

     0   :  { %7 = vsyncpa [#allocation3], 0  ;;  %s1534_s0 = inlined_call_operand.hbm [shape: f32[8,128], index: 0, kind: input, shape index: {}]   ;;  %s1535_s1 = inlined_call_operand.hbm [shape: f32[240,128], index: 1, kind: input, shape index: {}]   ;;  %s1536_s2 = inlined_call_operand.hbm [shape: f32[8,128], index: 2, kind: output, shape index: {}]  }
   0x1   :  { %8 = vsyncpa [#allocation6], 0 }
   0x2   :  { %9 = vsyncpa [#allocation4], 0  ;;  %s1349_s9 = smov [#allocation2]   ;;  %s1350_s11 = smov [#allocation5]  }
   0x3   :  { %s16_s10 = sshll.u32 %s1349_s9, 4  ;;  %s25_s12 = sshll.u32 %s1350_s11, 4  ;;  %s17_s10 = int_to_ptr.vmem [resolvable:$true] %s16_s10  ;;  %s1372_s12 = int_to_ptr.vmem [resolvable:$true] %s25_s12 }
   0x4   :  { %s1277_s15 = scalar_lea.hbm %s1534_s0, 128 }
   0x5   :  { %p1278_p0 = scmp.ne.s32.totalorder %s1534_s0, %s1277_s15  ;;  %p1281_p1 = scmp.lt.u32.totalorder %s1277_s15, %s1534_s0 }
   0x7   :  { %p1283_p2 = pnand %p1281_p1, %p1278_p0 }
   0x9   :  { %1286 = shalt.err (!%p1283_p2)
}
   0xa   :  { %s1287_s20 = scalar_lea.vmem %s17_s10, 128  ;;  %p1292_p4 = scmp.lt.s32.totalorder %s17_s10, %s17_s10 }
   0xb   :  { %p1288_p3 = scmp.ne.s32.totalorder %s17_s10, %s1287_s20  ;;  %p1293_p5 = scmp.lt.s32.totalorder %s1287_s20, %s1287_s20 }
   0xd   :  { %p1294_p6 = por %p1293_p5, %p1292_p4 }
   0xf   :  { %p1295_p7 = pnand %p1294_p6, %p1288_p3 }
  0x11   :  { %1298 = shalt.err (!%p1295_p7)
}
  0x12   :  { %19 = dma.hbm_to_vmem [thread:$0]  %s1534_s0, 128, %s17_s10, [#allocation3]  }
  0x13   :  { %s1299_s25 = scalar_lea.hbm %s1535_s1, 3840 }
  0x14   :  { %p1300_p8 = scmp.ne.s32.totalorder %s1535_s1, %s1299_s25  ;;  %p1303_p9 = scmp.lt.u32.totalorder %s1299_s25, %s1535_s1 }
  0x16   :  { %p1305_p10 = pnand %p1303_p9, %p1300_p8 }
  0x18   :  { %1308 = shalt.err (!%p1305_p10)
}
  0x19   :  { %s1309_s30 = scalar_lea.vmem %s1372_s12, 3840  ;;  %p1314_p12 = scmp.lt.s32.totalorder %s1372_s12, %s1372_s12 }
  0x1a   :  { %p1310_p11 = scmp.ne.s32.totalorder %s1372_s12, %s1309_s30  ;;  %p1315_p13 = scmp.lt.s32.totalorder %s1309_s30, %s1309_s30 }
  0x1c   :  { %p1316_p0 = por %p1315_p13, %p1314_p12 }
  0x1e   :  { %p1317_p1 = pnand %p1316_p0, %p1310_p11 }
  0x20   :  { %1320 = shalt.err (!%p1317_p1)
}
  0x21   :  { %s1351_s0 = smov 128   ;;  %s1352_s3 = smov 8  }
  0x22   :  { %31 = dma.hbm_to_vmem [thread:$0]  %s1535_s1, 3840, %s1372_s12, [#allocation6], %s1351_s0, %s1351_s0, %s1352_s3  }
  0x23   :  { %1343 = dma.done.wait [#allocation3], 128  }
  0x24   :  { %1344 = vsyncadd [#allocation3], 4294967168 }
  0x25   :  { %1345 = dma.done.wait [#allocation6], 3840  }
  0x26   :  { %1346 = vsyncadd [#allocation6], 4294963456  ;;  %v1353_v0 = vmov 0.0|0.0   ;;  %vm1354_vm0 = vmmov 0   ;;  %v1355_v1 = vmov 0.0   ;;  %v39_v2 = vld [vmem:[#allocation5] sm:$0xff]  ;;  %v202_v43 = vlaneseq }
  0x27   :  { %1119 = vmatprep.subr.bf16.mxu1 %v1353_v0  ;;  %1095 = vmatprep.subr.bf16.mxu0 %v1353_v0  ;;  %v1409_v3 = vld [vmem:[#allocation5 + $0x8] sm:$0xff]  ;;  %v1411_v4 = vld [vmem:[#allocation5 + $0x10] sm:$0xff]  ;;  %v1414_v6 = vld [vmem:[#allocation5 + $0x18] sm:$0xff]  ;;  %s1356_s1 = smov [#allocation7]  }
  0x28   :  { %917 = vmatprep.mubr.msk.f32.mxu1 %vm1354_vm0, %v1355_v1  ;;  %882 = vmatprep.mubr.msk.f32.mxu0 %vm1354_vm0, %v1355_v1  ;;  %v1096_v5 = vpack.c.bf16 %v1409_v3, %v39_v2  ;;  %v1099_v7 = vpack.c.bf16 %v1414_v6, %v1411_v4  ;;  %v1420_v8 = vld [vmem:[#allocation5 + $0x20] sm:$0xff]  ;;  %v1422_v9 = vld [vmem:[#allocation5 + $0x28] sm:$0xff]  ;;  %v38_v10 = vld [vmem:[#allocation2] sm:$0xff]  ;;  %v1144_v34 = vpack.c.bf16 %v1411_v4, %v1409_v3  ;;  %v203_v44 = vshrl.u32 %v202_v43, 7  ;;  %s714_s6 = sshll.u32 %s1356_s1, 4  ;;  %s715_s6 = int_to_ptr.vmem [resolvable:$true] %s714_s6 }
  0x29   :  { %v125_v11 = vrot.slane %v38_v10, 4  ;;  %v1102_v12 = vpack.c.bf16 %v1422_v9, %v1420_v8  ;;  %v45_v13 = vld [vmem:[#allocation5 + $0x30] sm:$0xff]  ;;  %v1428_v14 = vld [vmem:[#allocation5 + $0x38] sm:$0xff]  ;;  %v47_v17 = vld [vmem:[#allocation5 + $0x40] sm:$0xff]  ;;  %v1147_v35 = vpack.c.bf16 %v1420_v8, %v1414_v6  ;;  %s1321_s7 = scalar_lea.vmem %s715_s6, 128  ;;  %p1326_p3 = scmp.lt.s32.totalorder %s715_s6, %s715_s6 }
  0x2a   :  { %1121 = vmatpush3.bf16.msra.mxu1 %v1096_v5  ;;  %1097 = vmatpush3.bf16.msra.mxu0 %v1096_v5  ;;  %v1105_v16 = vpack.c.bf16 %v1428_v14, %v45_v13  ;;  %v48_v18 = vld [vmem:[#allocation5 + $0x48] sm:$0xff]  ;;  %v49_v21 = vld [vmem:[#allocation5 + $0x50] sm:$0xff]  ;;  %v50_v22 = vld [vmem:[#allocation5 + $0x58] sm:$0xff]  ;;  %v1150_v36 = vpack.c.bf16 %v45_v13, %v1422_v9  ;;  %v1153_v37 = vpack.c.bf16 %v47_v17, %v1428_v14  ;;  %v1481_v45 = vsub.s32 0, %v203_v44  ;;  %p1322_p2 = scmp.ne.s32.totalorder %s715_s6, %s1321_s7  ;;  %p1327_p4 = scmp.lt.s32.totalorder %s1321_s7, %s1321_s7 }
  0x2b   :  { %1122 = vmatprep.subr.bf16.mxu1 %v1353_v0  ;;  %1098 = vmatprep.subr.bf16.mxu0 %v1353_v0  ;;  %v126_v15 = vadd.f32 %v125_v11, %v38_v10  ;;  %v1108_v20 = vpack.c.bf16 %v48_v18, %v47_v17  ;;  %v1111_v24 = vpack.c.bf16 %v50_v22, %v49_v21  ;;  %v51_v25 = vld [vmem:[#allocation5 + $0x60] sm:$0xff]  ;;  %v52_v26 = vld [vmem:[#allocation5 + $0x68] sm:$0xff]  ;;  %v53_v29 = vld [vmem:[#allocation5 + $0x70] sm:$0xff] }
  0x2c   :  { %v1114_v28 = vpack.c.bf16 %v52_v26, %v51_v25  ;;  %v54_v30 = vld [vmem:[#allocation5 + $0x78] sm:$0xff]  ;;  %v1461_v38 = vpack.c.bf16 %v49_v21, %v48_v18  ;;  %v1159_v39 = vpack.c.bf16 %v51_v25, %v50_v22  ;;  %v1469_v40 = vpack.c.bf16 %v53_v29, %v52_v26  ;;  %v246_v41 = vld [vmem:[#allocation5 + $0x80] sm:$0xff]  ;;  %v724_v62 = vld [vmem:[#allocation5 + $0xe8] ss:$0 sm:$0xff]  ;;  %p1328_p5 = por %p1327_p4, %p1326_p3 }
  0x2d   :  { %v127_v19 = vrot.slane %v126_v15, 2  ;;  %v1117_v32 = vpack.c.bf16 %v54_v30, %v53_v29  ;;  %v1475_v42 = vpack.c.bf16 %v246_v41, %v54_v30  ;;  %v725_v2 = vld [vmem:[#allocation5 + $0xe9] ss:$0 sm:$0xff]  ;;  %v432_v14 = vld [vmem:[#allocation5 + $0x90] sm:$0xff]  ;;  %v434_v17 = vld [vmem:[#allocation5 + $0xa0] sm:$0xff] }
  0x2e   :  { %1124 = vmatpush3.bf16.msra.mxu1 %v1099_v7  ;;  %1100 = vmatpush3.bf16.msra.mxu0 %v1099_v7  ;;  %v431_v13 = vld [vmem:[#allocation5 + $0x88] sm:$0xff]  ;;  %v437_v22 = vld [vmem:[#allocation5 + $0xb8] sm:$0xff]  ;;  %p1329_p6 = pnand %p1328_p5, %p1322_p2 }
  0x2f   :  { %1125 = vmatprep.subr.bf16.mxu1 %v1353_v0  ;;  %1101 = vmatprep.subr.bf16.mxu0 %v1353_v0  ;;  %v128_v23 = vadd.f32 %v127_v19, %v126_v15  ;;  %v1204_v15 = vpack.c.bf16 %v432_v14, %v431_v13  ;;  %v435_v19 = vld [vmem:[#allocation5 + $0xa8] sm:$0xff] }
  0x30   :  { %v726_v43 = vld [vmem:[#allocation5 + $0xea] ss:$0 sm:$0xff]  ;;  %v728_v13 = vld [vmem:[#allocation5 + $0xec] ss:$0 sm:$0xff] }
  0x31   :  { %v129_v27 = vrot.slane %v128_v23, 1 }
  0x32   :  { %1127 = vmatpush3.bf16.msra.mxu1 %v1102_v12  ;;  %1103 = vmatpush3.bf16.msra.mxu0 %v1102_v12 }
  0x33   :  { %1128 = vmatprep.subr.bf16.mxu1 %v1353_v0  ;;  %1104 = vmatprep.subr.bf16.mxu0 %v1353_v0  ;;  %v130_v31 = vadd.f32 %v129_v27, %v128_v23  ;;  %v438_v23 = vld [vmem:[#allocation5 + $0xc0] sm:$0xff] }
  0x35   :  { %v131_v33 = vmul.f32 0.125, %v130_v31 }
  0x36   :  { %1130 = vmatpush3.bf16.msra.mxu1 %v1105_v16  ;;  %1106 = vmatpush3.bf16.msra.mxu0 %v1105_v16  ;;  %v433_v16 = vld [vmem:[#allocation5 + $0x98] sm:$0xff] }
  0x37   :  { %1131 = vmatprep.subr.bf16.mxu1 %v1353_v0  ;;  %1107 = vmatprep.subr.bf16.mxu0 %v1353_v0  ;;  %v1207_v18 = vpack.c.bf16 %v434_v17, %v433_v16 }
  0x3a   :  { %1133 = vmatpush3.bf16.msra.mxu1 %v1108_v20  ;;  %1109 = vmatpush3.bf16.msra.mxu0 %v1108_v20  ;;  %v436_v20 = vld [vmem:[#allocation5 + $0xb0] sm:$0xff] }
  0x3b   :  { %1134 = vmatprep.subr.bf16.mxu1 %v1353_v0  ;;  %1110 = vmatprep.subr.bf16.mxu0 %v1353_v0  ;;  %v1210_v21 = vpack.c.bf16 %v436_v20, %v435_v19 }
  0x3e   :  { %1136 = vmatpush3.bf16.msra.mxu1 %v1111_v24  ;;  %1112 = vmatpush3.bf16.msra.mxu0 %v1111_v24  ;;  %v1213_v24 = vpack.c.bf16 %v438_v23, %v437_v22 }
  0x3f   :  { %1137 = vmatprep.subr.bf16.mxu1 %v1353_v0  ;;  %1113 = vmatprep.subr.bf16.mxu0 %v1353_v0 }
  0x42   :  { %1139 = vmatpush3.bf16.msra.mxu1 %v1114_v28  ;;  %1115 = vmatpush3.bf16.msra.mxu0 %v1114_v28 }
  0x43   :  { %1140 = vmatprep.subr.bf16.mxu1 %v1353_v0  ;;  %1116 = vmatprep.subr.bf16.mxu0 %v1353_v0 }
  0x46   :  { %1142 = vmatpush3.bf16.msra.mxu1 %v1117_v32  ;;  %1118 = vmatpush3.bf16.msra.mxu0 %v1117_v32 }
  0x47   :  { %1143 = vmatprep.subr.bf16.mxu0 %v1353_v0  ;;  %1167 = vmatprep.subr.bf16.mxu1 %v1353_v0 }
  0x49   :  { %918 = vmatmul.mubr.f32.vlgmr.msra.gmra.mrb[0].mxu1 %v131_v33  ;;  %883 = vmatmul.mubr.f32.vlgmr.msra.gmra.mrb[0].mxu0 %v38_v10 }
  0x4a   :  { %952 = vmatprep.mubr.msk.f32.mxu0 %vm1354_vm0, %v1355_v1  ;;  %987 = vmatprep.mubr.msk.f32.mxu1 %vm1354_vm0, %v1355_v1 }
  0x4b   :  { %1145 = vmatpush3.bf16.msra.mxu0 %v1144_v34  ;;  %1169 = vmatpush3.bf16.msra.mxu1 %v1144_v34 }
  0x4c   :  { %1146 = vmatprep.subr.bf16.mxu0 %v1353_v0  ;;  %1170 = vmatprep.subr.bf16.mxu1 %v1353_v0 }
  0x4f   :  { %1148 = vmatpush3.bf16.msra.mxu0 %v1147_v35  ;;  %1172 = vmatpush3.bf16.msra.mxu1 %v1147_v35 }
  0x50   :  { %1149 = vmatprep.subr.bf16.mxu0 %v1353_v0  ;;  %1173 = vmatprep.subr.bf16.mxu1 %v1353_v0 }
  0x53   :  { %1151 = vmatpush3.bf16.msra.mxu0 %v1150_v36  ;;  %1175 = vmatpush3.bf16.msra.mxu1 %v1150_v36 }
  0x54   :  { %1152 = vmatprep.subr.bf16.mxu0 %v1353_v0  ;;  %1176 = vmatprep.subr.bf16.mxu1 %v1353_v0 }
  0x57   :  { %1154 = vmatpush3.bf16.msra.mxu0 %v1153_v37  ;;  %1178 = vmatpush3.bf16.msra.mxu1 %v1153_v37 }
  0x58   :  { %1155 = vmatprep.subr.bf16.mxu0 %v1353_v0  ;;  %1179 = vmatprep.subr.bf16.mxu1 %v1353_v0 }
  0x5b   :  { %1157 = vmatpush3.bf16.msra.mxu0 %v1461_v38  ;;  %1181 = vmatpush3.bf16.msra.mxu1 %v1461_v38 }
  0x5c   :  { %1158 = vmatprep.subr.bf16.mxu0 %v1353_v0  ;;  %1182 = vmatprep.subr.bf16.mxu1 %v1353_v0 }
  0x5f   :  { %1160 = vmatpush3.bf16.msra.mxu0 %v1159_v39  ;;  %1184 = vmatpush3.bf16.msra.mxu1 %v1159_v39 }
  0x60   :  { %1161 = vmatprep.subr.bf16.mxu0 %v1353_v0  ;;  %1185 = vmatprep.subr.bf16.mxu1 %v1353_v0 }
  0x63   :  { %1163 = vmatpush3.bf16.msra.mxu0 %v1469_v40  ;;  %1187 = vmatpush3.bf16.msra.mxu1 %v1469_v40 }
  0x64   :  { %1164 = vmatprep.subr.bf16.mxu0 %v1353_v0  ;;  %1188 = vmatprep.subr.bf16.mxu1 %v1353_v0 }
  0x67   :  { %1166 = vmatpush3.bf16.msra.mxu0 %v1475_v42  ;;  %1190 = vmatpush3.bf16.msra.mxu1 %v1475_v42 }
  0x68   :  { %1191 = vmatprep.subr.bf16.mxu0 %v1353_v0  ;;  %1215 = vmatprep.subr.bf16.mxu1 %v1353_v0 }
 0x11c   :  { %v198_v46 = vpop.f32.mrb[0].mxu1  ;;  %v121_v47 = vpop.f32.mrb[0].mxu0 }
 0x11d   :  { %v205_v48 = vrot.slane %v198_v46, %v1481_v45  ;;  %v919_v49 = vpop.f32.mrb[1].mxu1  ;;  %v884_v50 = vpop.f32.mrb[1].mxu0  ;;  %v727_v46 = vld [vmem:[#allocation5 + $0xeb] ss:$0 sm:$0xff] }
 0x11f   :  { %v206_v51 = vsub.f32 %v121_v47, %v205_v48 }
 0x121   :  { %v207_v52 = vmul.f32 %v206_v51, %v206_v51 }
 0x123   :  { %v208_v53 = vrot.slane %v207_v52, 4 }
 0x125   :  { %v209_v54 = vadd.f32 %v208_v53, %v207_v52 }
 0x127   :  { %v210_v55 = vrot.slane %v209_v54, 2 }
 0x129   :  { %v211_v56 = vadd.f32 %v210_v55, %v209_v54 }
 0x12b   :  { %v212_v57 = vrot.slane %v211_v56, 1 }
 0x12d   :  { %v213_v58 = vadd.f32 %v212_v57, %v211_v56  ;;  %v629_v57 = vld [vmem:[#allocation5 + $0xd8] sm:$0xff] }
 0x12f   :  { %v214_v59 = vmul.f32 0.125, %v213_v58  ;;  %v630_v58 = vld [vmem:[#allocation5 + $0xe0] sm:$0xff] }
 0x131   :  { %v215_v60 = vadd.f32 1e-05, %v214_v59  ;;  %v1261_v59 = vpack.c.bf16 %v630_v58, %v629_v57 }
 0x133   :  { %1271 = vrsqrt.f32 %v215_v60 }
 0x13d   :  { %v1272_v61 = vpop.eup %1271 }
 0x13e   :  { %v217_v63 = vmul.f32 %v1272_v61, %v206_v51 }
 0x140   :  { %v224_v3 = vmul.f32 %v724_v62, %v217_v63 }
 0x142   :  { %v229_v4 = vadd.f32 %v725_v2, %v224_v3 }
 0x144   :  { %v230_v5 = vmax.f32 %v229_v4, 0.0 }
 0x146   :  { %v317_v6 = vrot.slane %v230_v5, 4  ;;  %953 = vmatmul.mubr.f32.vlgmr.msra.gmra.mrb[2].mxu0 %v230_v5 }
 0x147   :  { %1193 = vmatpush3.bf16.msra.mxu0 %v1461_v38  ;;  %1022 = vmatprep.mubr.msk.f32.mxu0 %vm1354_vm0, %v1355_v1 }
 0x148   :  { %v318_v7 = vadd.f32 %v317_v6, %v230_v5  ;;  %1194 = vmatprep.subr.bf16.mxu0 %v1353_v0 }
 0x14a   :  { %v319_v8 = vrot.slane %v318_v7, 2 }
 0x14b   :  { %1196 = vmatpush3.bf16.msra.mxu0 %v1159_v39 }
 0x14c   :  { %v320_v9 = vadd.f32 %v319_v8, %v318_v7  ;;  %1197 = vmatprep.subr.bf16.mxu0 %v1353_v0 }
 0x14e   :  { %v321_v10 = vrot.slane %v320_v9, 1 }
 0x14f   :  { %1199 = vmatpush3.bf16.msra.mxu0 %v1469_v40 }
 0x150   :  { %v322_v11 = vadd.f32 %v321_v10, %v320_v9  ;;  %1200 = vmatprep.subr.bf16.mxu0 %v1353_v0 }
 0x152   :  { %v323_v12 = vmul.f32 0.125, %v322_v11 }
 0x153   :  { %1202 = vmatpush3.bf16.msra.mxu0 %v1475_v42 }
 0x154   :  { %988 = vmatmul.mubr.f32.vlgmr.msra.gmra.mrb[2].mxu1 %v323_v12  ;;  %1203 = vmatprep.subr.bf16.mxu0 %v1353_v0 }
 0x155   :  { %1217 = vmatpush3.bf16.msra.mxu1 %v1461_v38  ;;  %1057 = vmatprep.mubr.msk.f32.mxu1 %vm1354_vm0, %v1355_v1 }
 0x156   :  { %1218 = vmatprep.subr.bf16.mxu1 %v1353_v0 }
 0x157   :  { %1205 = vmatpush3.bf16.msra.mxu0 %v1204_v15 }
 0x158   :  { %1206 = vmatprep.subr.bf16.mxu0 %v1353_v0 }
 0x159   :  { %1220 = vmatpush3.bf16.msra.mxu1 %v1159_v39 }
 0x15a   :  { %1221 = vmatprep.subr.bf16.mxu1 %v1353_v0 }
 0x15b   :  { %1208 = vmatpush3.bf16.msra.mxu0 %v1207_v18 }
 0x15c   :  { %1209 = vmatprep.subr.bf16.mxu0 %v1353_v0 }
 0x15d   :  { %1223 = vmatpush3.bf16.msra.mxu1 %v1469_v40 }
 0x15e   :  { %1224 = vmatprep.subr.bf16.mxu1 %v1353_v0 }
 0x15f   :  { %1211 = vmatpush3.bf16.msra.mxu0 %v1210_v21 }
 0x160   :  { %1212 = vmatprep.subr.bf16.mxu0 %v1353_v0 }
 0x161   :  { %1226 = vmatpush3.bf16.msra.mxu1 %v1475_v42 }
 0x162   :  { %1227 = vmatprep.subr.bf16.mxu1 %v1353_v0 }
 0x163   :  { %1214 = vmatpush3.bf16.msra.mxu0 %v1213_v24 }
 0x164   :  { %1239 = vmatprep.subr.bf16.mxu0 %v1353_v0 }
 0x165   :  { %1229 = vmatpush3.bf16.msra.mxu1 %v1204_v15 }
 0x166   :  { %1230 = vmatprep.subr.bf16.mxu1 %v1353_v0 }
 0x169   :  { %1232 = vmatpush3.bf16.msra.mxu1 %v1207_v18 }
 0x16a   :  { %1233 = vmatprep.subr.bf16.mxu1 %v1353_v0 }
 0x16d   :  { %1235 = vmatpush3.bf16.msra.mxu1 %v1210_v21 }
 0x16e   :  { %1236 = vmatprep.subr.bf16.mxu1 %v1353_v0 }
 0x171   :  { %1238 = vmatpush3.bf16.msra.mxu1 %v1213_v24 }
 0x219   :  { %v313_v25 = vpop.f32.mrb[2].mxu0 }
 0x21a   :  { %v954_v26 = vpop.f32.mrb[3].mxu0 }
 0x227   :  { %v390_v27 = vpop.f32.mrb[2].mxu1 }
 0x228   :  { %v397_v28 = vrot.slane %v390_v27, %v1481_v45  ;;  %v989_v29 = vpop.f32.mrb[3].mxu1 }
 0x22a   :  { %v398_v30 = vsub.f32 %v313_v25, %v397_v28 }
 0x22c   :  { %v399_v31 = vmul.f32 %v398_v30, %v398_v30 }
 0x22e   :  { %v400_v32 = vrot.slane %v399_v31, 4 }
 0x230   :  { %v401_v33 = vadd.f32 %v400_v32, %v399_v31 }
 0x232   :  { %v402_v34 = vrot.slane %v401_v33, 2 }
 0x234   :  { %v403_v35 = vadd.f32 %v402_v34, %v401_v33 }
 0x236   :  { %v404_v36 = vrot.slane %v403_v35, 1 }
 0x238   :  { %v405_v37 = vadd.f32 %v404_v36, %v403_v35 }
 0x23a   :  { %v406_v38 = vmul.f32 0.125, %v405_v37 }
 0x23c   :  { %v407_v39 = vadd.f32 1e-05, %v406_v38 }
 0x23e   :  { %1273 = vrsqrt.f32 %v407_v39 }
 0x248   :  { %v1274_v41 = vpop.eup %1273 }
 0x249   :  { %v409_v44 = vmul.f32 %v1274_v41, %v398_v30 }
 0x24b   :  { %v416_v47 = vmul.f32 %v726_v43, %v409_v44 }
 0x24d   :  { %v421_v48 = vadd.f32 %v727_v46, %v416_v47 }
 0x24f   :  { %v422_v49 = vmax.f32 %v421_v48, 0.0 }
 0x251   :  { %1023 = vmatmul.mubr.f32.vlgmr.msra.gmra.mrb[4].mxu0 %v422_v49  ;;  %v509_v50 = vrot.slane %v422_v49, 4 }
 0x252   :  { %1241 = vmatpush3.bf16.msra.mxu0 %v1469_v40  ;;  %1092 = vmatprep.mubr.msk.f32.mxu0 %vm1354_vm0, %v1355_v1  ;;  %v627_v1 = vld [vmem:[#allocation5 + $0xc8] sm:$0xff]  ;;  %v628_v40 = vld [vmem:[#allocation5 + $0xd0] sm:$0xff] }
 0x253   :  { %v510_v51 = vadd.f32 %v509_v50, %v422_v49  ;;  %1242 = vmatprep.subr.bf16.mxu0 %v1353_v0 }
 0x255   :  { %v511_v52 = vrot.slane %v510_v51, 2 }
 0x256   :  { %1244 = vmatpush3.bf16.msra.mxu0 %v1475_v42  ;;  %v1258_v42 = vpack.c.bf16 %v628_v40, %v627_v1 }
 0x257   :  { %v512_v53 = vadd.f32 %v511_v52, %v510_v51  ;;  %1245 = vmatprep.subr.bf16.mxu0 %v1353_v0 }
 0x259   :  { %v513_v54 = vrot.slane %v512_v53, 1 }
 0x25a   :  { %1247 = vmatpush3.bf16.msra.mxu0 %v1204_v15  ;;  %v729_v15 = vld [vmem:[#allocation5 + $0xed] ss:$0 sm:$0xff] }
 0x25b   :  { %v514_v55 = vadd.f32 %v513_v54, %v512_v53  ;;  %1248 = vmatprep.subr.bf16.mxu0 %v1353_v0 }
 0x25d   :  { %v515_v56 = vmul.f32 0.125, %v514_v55 }
 0x25e   :  { %1250 = vmatpush3.bf16.msra.mxu0 %v1207_v18 }
 0x25f   :  { %1058 = vmatmul.mubr.f32.vlgmr.msra.gmra.mrb[4].mxu1 %v515_v56  ;;  %1251 = vmatprep.subr.bf16.mxu0 %v1353_v0 }
 0x262   :  { %1253 = vmatpush3.bf16.msra.mxu0 %v1210_v21 }
 0x263   :  { %1254 = vmatprep.subr.bf16.mxu0 %v1353_v0 }
 0x266   :  { %1256 = vmatpush3.bf16.msra.mxu0 %v1213_v24 }
 0x267   :  { %1257 = vmatprep.subr.bf16.mxu0 %v1353_v0 }
 0x26a   :  { %1259 = vmatpush3.bf16.msra.mxu0 %v1258_v42 }
 0x26b   :  { %1260 = vmatprep.subr.bf16.mxu0 %v1353_v0 }
 0x26e   :  { %1262 = vmatpush3.bf16.msra.mxu0 %v1261_v59 }
 0x324   :  { %v505_v60 = vpop.f32.mrb[4].mxu0 }
 0x325   :  { %v1024_v61 = vpop.f32.mrb[5].mxu0 }
 0x332   :  { %v582_v62 = vpop.f32.mrb[4].mxu1 }
 0x333   :  { %v589_v63 = vrot.slane %v582_v62, %v1481_v45  ;;  %v1059_v2 = vpop.f32.mrb[5].mxu1  ;;  %v730_v45 = vld [vmem:[#allocation5 + $0xee] ss:$0 sm:$0xff] }
 0x335   :  { %v590_v3 = vsub.f32 %v505_v60, %v589_v63 }
 0x337   :  { %v591_v4 = vmul.f32 %v590_v3, %v590_v3 }
 0x339   :  { %v592_v5 = vrot.slane %v591_v4, 4 }
 0x33b   :  { %v593_v6 = vadd.f32 %v592_v5, %v591_v4 }
 0x33d   :  { %v594_v7 = vrot.slane %v593_v6, 2 }
 0x33f   :  { %v595_v8 = vadd.f32 %v594_v7, %v593_v6 }
 0x341   :  { %v596_v9 = vrot.slane %v595_v8, 1 }
 0x343   :  { %v597_v10 = vadd.f32 %v596_v9, %v595_v8 }
 0x345   :  { %v598_v11 = vmul.f32 0.125, %v597_v10 }
 0x347   :  { %v599_v0 = vadd.f32 1e-05, %v598_v11 }
 0x349   :  { %1275 = vrsqrt.f32 %v599_v0 }
 0x353   :  { %v1276_v12 = vpop.eup %1275 }
 0x354   :  { %v601_v14 = vmul.f32 %v1276_v12, %v590_v3 }
 0x356   :  { %v608_v16 = vmul.f32 %v728_v13, %v601_v14 }
 0x358   :  { %v613_v17 = vadd.f32 %v729_v15, %v608_v16 }
 0x35a   :  { %v614_v18 = vmax.f32 %v613_v17, 0.0 }
 0x35c   :  { %1093 = vmatmul.mubr.f32.vlgmr.msra.gmra.mrb[6].mxu0 %v614_v18 }
 0x42f   :  { %v702_v19 = vpop.f32.mrb[6].mxu0 }
 0x430   :  { %v703_v20 = vadd.f32 %v730_v45, %v702_v19  ;;  %v1094_v21 = vpop.f32.mrb[7].mxu0 }
 0x432   :  { %v706_v22 = vmax.f32 %v703_v20, 0.0 }
 0x434   :  { %707 = vst [vmem:[#allocation7] sm:$0xff] %v706_v22 }
 0x435   :  { %1332 = shalt.err (!%p1329_p6)
}
 0x436   :  { %s1333_s10 = scalar_lea.hbm %s1536_s2, 128 }
 0x437   :  { %p1334_p7 = scmp.ne.s32.totalorder %s1536_s2, %s1333_s10  ;;  %p1337_p8 = scmp.lt.u32.totalorder %s1333_s10, %s1536_s2 }
 0x439   :  { %p1339_p9 = pnand %p1337_p8, %p1334_p7 }
 0x43b   :  { %1342 = shalt.err (!%p1339_p9)
}
 0x43c   :  { %717 = dma.vmem_to_hbm [thread:$0]  %s715_s6, 128, %s1536_s2, [#allocation4]  }
 0x43d   :  { %1347 = dma.done.wait [#allocation4], 128  }
 0x43e   :  { %1348 = vsyncadd [#allocation4], 4294967168 }
 0x43f   :  { %721 = vsyncpa [#allocation3], 1 }
 0x440   :  { %722 = vsyncpa [#allocation6], 1 }
 0x441   :  { %723 = vsyncpa [#allocation4], 1 }

</bundles_post_ra>
